<compile_context>
chip_gen: v7x
topology: tpu7x:2x2x1
jax: 0.10.0
libtpu: 0.0.40
codegen_flags: <defaults>
</compile_context>

<pallas_src>
import functools

import jax
import jax.numpy as jnp
import numpy as np
from jax import lax
from jax.experimental import pallas as pl
from jax.experimental.pallas import tpu as pltpu

BIG_NEG = 1e12
_DN_LAST = (((1,), (1,)), ((), ()))  # dot_general: contract the last dim of both operands


def _round_up(n, m):
    return ((n + m - 1) // m) * m


def _pick_heads_per_block(E, S_pad, out_itemsize, budget_bytes=12 * 1024 * 1024):
    """Largest divisor TE of E whose double-buffered (1,TE,S,S) out block fits the budget."""
    best = 1
    for te in range(1, E + 1):
        if E % te == 0 and 2 * te * S_pad * S_pad * out_itemsize <= budget_bytes:
            best = te
    return best


def _egp_kernel(x_ref, w1_ref, b1_ref, w2k_ref, b2k_ref, w2q_ref, b2q_ref,
                cos_ref, sin_ref, mask_ref, out_ref,
                proj_scr, base_scr, *, head_size, heads_per_block, compute_dtype):
    D = head_size
    Dh = D // 2
    S = base_scr.shape[0]
    t_idx = pl.program_id(1)                  # entity-head tile index
    pad = mask_ref[0]                         # [1, S] key/column mask

    # ---- head-invariant work: once per batch element, kept in VMEM scratch ----
    @pl.when(t_idx == 0)
    def _():
        x = x_ref[0]                                                        # [S, H]
        proj = jnp.dot(x, w1_ref[...],
                       preferred_element_type=jnp.float32) + b1_ref[...]    # [S, 2D]
        proj_scr[...] = proj                                                # pre-RoPE (dense_2 input)

        # RoPE on the de-interleaved layout [q_even | q_odd | k_even | k_odd]:
        # pure VPU elementwise, then ONE full-depth (D) score matmul on the MXU.
        qe, qo = proj[:, 0:Dh], proj[:, Dh:D]
        ke, ko = proj[:, D:D + Dh], proj[:, D + Dh:2 * D]
        ce, co = cos_ref[:, 0:Dh], cos_ref[:, Dh:D]
        se, so = sin_ref[:, 0:Dh], sin_ref[:, Dh:D]
        inv_sqrt_d = 1.0 / (D ** 0.5)
        q_rot = jnp.concatenate([qe * ce - qo * se, qo * co + qe * so], axis=1) * inv_sqrt_d
        k_rot = jnp.concatenate([ke * ce - ko * se, ko * co + ke * so], axis=1)
        scores = lax.dot_general(q_rot.astype(compute_dtype), k_rot.astype(compute_dtype),
                                 _DN_LAST, preferred_element_type=jnp.float32)   # [S, S]

        # In-kernel tril mask (no [S,S] HBM input), fold padding mask once.
        row = lax.broadcasted_iota(jnp.int32, (S, S), 0)
        col = lax.broadcasted_iota(jnp.int32, (S, S), 1)
        tril_neg = jnp.where(row > col, jnp.float32(-BIG_NEG), jnp.float32(0.0))
        base_scr[...] = scores * pad + (pad - 1.0) * BIG_NEG + tril_neg

    # ---- per-head-tile work: one dense_2 matmul for TE heads, then broadcast-adds ----
    proj = proj_scr[...]                                                     # [S, 2D]
    w2k = w2k_ref[0]                                                         # [TE, 2D]
    w2q = w2q_ref[0]                                                         # [TE, 2D]
    # key bias rows: [TE, S]; pad folded in here (cheap) instead of an S^2 mul per head.
    bk = 0.5 * (lax.dot_general(w2k, proj, _DN_LAST,
                                preferred_element_type=jnp.float32) + b2k_ref[0]) * pad
    # query bias columns: [S, TE]
    bq = 0.5 * (lax.dot_general(proj, w2q, _DN_LAST,
                                preferred_element_type=jnp.float32) + b2q_ref[0])

    base = base_scr[...]
    for t in range(heads_per_block):          # static unroll: per-head = VPU add + store
        out_ref[0, t] = (base + bq[:, t:t + 1] + bk[t:t + 1, :]).astype(out_ref.dtype)


def efficient_global_pointer_forward(last_hidden_state, attention_mask,
                                     w1, b1, w2, b2, ent_type_size, head_size,
                                     compute_dtype=jnp.float32,
                                     out_dtype=jnp.float32,
                                     heads_per_block=None):
    """EfficientGlobalPointer forward (rope=True, tril_mask=True).

    last_hidden_state: [B, S, H]      attention_mask: [B, S]
    w1, b1: dense_1 params  [2*head_size, H], [2*head_size]
    w2, b2: dense_2 params  [2*ent_type_size, 2*head_size], [2*ent_type_size]
    Returns logits [B, ent_type_size, S, S] in `out_dtype`.
    On v6e/v7x, compute_dtype=bf16 (native MXU path) and out_dtype=bf16 (halves the
    HBM-writeback that dominates this kernel) are recommended when downstream tolerates it.
    """
    B, S, H = last_hidden_state.shape
    E, D = ent_type_size, head_size
    Dh = D // 2

    # ---------- host-side layout plumbing (no meaningful FLOPs) ----------
    # Pad S so output stores are lane/sublane friendly (slice back afterwards).
    S_pad = _round_up(S, 128 if S > 64 else 8)
    if S_pad != S:
        x_in = jnp.pad(jnp.asarray(last_hidden_state), ((0, 0), (0, S_pad - S), (0, 0)))
        attn_in = jnp.pad(jnp.asarray(attention_mask), ((0, 0), (0, S_pad - S)))
    else:
        x_in = jnp.asarray(last_hidden_state)
        attn_in = jnp.asarray(attention_mask)

    out_itemsize = jnp.dtype(out_dtype).itemsize
    if heads_per_block is None:
        heads_per_block = _pick_heads_per_block(E, S_pad, out_itemsize)
    TE = heads_per_block
    assert E % TE == 0, "heads_per_block must divide ent_type_size"
    n_tiles = E // TE

    # dense_1 output-column permutation -> [q_even | q_odd | k_even | k_odd]
    # (module: qw = outputs[..., ::2], kw = outputs[..., 1::2]).
    j = np.arange(Dh)
    col_perm = np.concatenate([4 * j, 4 * j + 2, 4 * j + 1, 4 * j + 3])         # len 2D
    w1p = jnp.asarray(w1).T[:, col_perm].astype(compute_dtype)                  # [H, 2D]
    b1p = jnp.asarray(b1)[col_perm][None, :].astype(jnp.float32)                # [1, 2D]

    # dense_2: permute its input columns the same way; split output channels into
    # key-bias (even channels) and query-bias (odd channels), tiled over head blocks.
    w2p = jnp.asarray(w2)[:, col_perm].astype(jnp.float32)                      # [2E, 2D]
    w2k = w2p[0::2].reshape(n_tiles, TE, 2 * D)                                 # key bias weights
    w2q = w2p[1::2].reshape(n_tiles, TE, 2 * D)                                 # query bias weights
    b2a = jnp.asarray(b2).astype(jnp.float32)
    b2k = b2a[0::2].reshape(n_tiles, TE, 1)
    b2q = b2a[1::2].reshape(n_tiles, 1, TE)

    # RoPE tables for the de-interleaved layout.  The module uses
    # cos_pos[d] = cos(p * theta[d % Dh]); original dim 2j -> "even" slot j, 2j+1 -> "odd" slot j.
    pos_ids = np.arange(S_pad, dtype=np.float32)
    theta = np.power(10000.0, -2.0 * np.arange(Dh, dtype=np.float32) / D)
    ang = pos_ids[:, None] * theta[None, :]                                     # [S_pad, Dh]
    idx_e = (2 * j) % Dh
    idx_o = (2 * j + 1) % Dh
    cos_t = jnp.asarray(np.concatenate([np.cos(ang)[:, idx_e],
                                        np.cos(ang)[:, idx_o]], axis=1), dtype=jnp.float32)
    sin_t = jnp.asarray(np.concatenate([np.sin(ang)[:, idx_e],
                                        np.sin(ang)[:, idx_o]], axis=1), dtype=jnp.float32)

    mask3 = attn_in.astype(jnp.float32).reshape(B, 1, S_pad)
    x = x_in.astype(compute_dtype)

    kernel = functools.partial(_egp_kernel, head_size=D, heads_per_block=TE,
                               compute_dtype=compute_dtype)
    out = pl.pallas_call(
        kernel,
        out_shape=jax.ShapeDtypeStruct((B, E, S_pad, S_pad), out_dtype),
        grid=(B, n_tiles),
        in_specs=[
            pl.BlockSpec((1, S_pad, H), lambda b, t: (b, 0, 0)),       # last_hidden_state
            pl.BlockSpec((H, 2 * D), lambda b, t: (0, 0)),             # dense_1 weight (permuted)
            pl.BlockSpec((1, 2 * D), lambda b, t: (0, 0)),             # dense_1 bias  (permuted)
            pl.BlockSpec((1, TE, 2 * D), lambda b, t: (t, 0, 0)),      # dense_2 key-bias weights (tile t)
            pl.BlockSpec((1, TE, 1), lambda b, t: (t, 0, 0)),          # dense_2 key-bias b
            pl.BlockSpec((1, TE, 2 * D), lambda b, t: (t, 0, 0)),      # dense_2 query-bias weights
            pl.BlockSpec((1, 1, TE), lambda b, t: (t, 0, 0)),          # dense_2 query-bias b
            pl.BlockSpec((S_pad, D), lambda b, t: (0, 0)),             # RoPE cos table
            pl.BlockSpec((S_pad, D), lambda b, t: (0, 0)),             # RoPE sin table
            pl.BlockSpec((1, 1, S_pad), lambda b, t: (b, 0, 0)),       # attention mask
        ],
        out_specs=pl.BlockSpec((1, TE, S_pad, S_pad), lambda b, t: (b, t, 0, 0)),
        scratch_shapes=[
            pltpu.VMEM((S_pad, 2 * D), jnp.float32),   # pre-RoPE dense_1 output (persists over head tiles)
            pltpu.VMEM((S_pad, S_pad), jnp.float32),   # masked, scaled q.k^T     (persists over head tiles)
        ],
        compiler_params=pltpu.CompilerParams(
            dimension_semantics=("parallel", "arbitrary"),
            vmem_limit_bytes=48 * 1024 * 1024),        # headroom under v7x's 64 MiB physical VMEM
    )(x, w1p, b1p, w2k, b2k, w2q, b2q, cos_t, sin_t, mask3)

    if S_pad != S:
        out = out[:, :, :S, :S]
    return out


def efficient_global_pointer_reference(x, attn, w1, b1, w2, b2, ent_type_size, head_size):
    """Pure-JAX mirror of EfficientGlobalPointer.forward (for correctness checking)."""
    B, S, H = x.shape
    D = head_size
    hp = jax.lax.Precision.HIGHEST

    outputs = jnp.matmul(x, w1.T, precision=hp) + b1                     # [B, S, 2D]
    qw, kw = outputs[..., 0::2], outputs[..., 1::2]

    # SinusoidalPositionEmbedding(head_size, 'zero'): interleaved [sin, cos].
    pos_ids = jnp.arange(S, dtype=jnp.float32)
    theta = jnp.power(10000.0, -2.0 * jnp.arange(D // 2, dtype=jnp.float32) / D)
    ang = pos_ids[:, None] * theta[None, :]
    pos = jnp.stack([jnp.sin(ang), jnp.cos(ang)], axis=-1).reshape(1, S, D)
    cos_pos = jnp.tile(pos[..., 1::2], (1, 1, 2))                        # torch .repeat(1, 1, 2)
    sin_pos = jnp.tile(pos[..., 0::2], (1, 1, 2))

    def rot(t):
        t2 = jnp.stack([-t[..., 1::2], t[..., 0::2]], axis=-1)
        return t2.reshape(t.shape)

    qw = qw * cos_pos + rot(qw) * sin_pos
    kw = kw * cos_pos + rot(kw) * sin_pos

    logits = jnp.einsum('bmd,bnd->bmn', qw, kw, precision=hp) / D ** 0.5
    bias = jnp.einsum('bnh->bhn', jnp.matmul(outputs, w2.T, precision=hp) + b2) / 2.0
    logits = logits[:, None, :, :] + bias[:, 0::2, None, :] + bias[:, 1::2, :, None]

    pad = attn.astype(jnp.float32)[:, None, None, :]
    logits = logits * pad - (1.0 - pad) * BIG_NEG
    tril = jnp.tril(jnp.ones((S, S), jnp.float32), -1)
    logits = logits - tril * BIG_NEG
    return logits


if __name__ == "__main__":
    # small shapes: batch=2, seq=8, hidden=32, ent_type_size=3, head_size=8
    B, S, H = 2, 8, 32
    E, D = 3, 8

    key = jax.random.PRNGKey(0)
    k1, k2, k3, k4, k5 = jax.random.split(key, 5)
    x = jax.random.normal(k1, (B, S, H), dtype=jnp.float32)
    w1 = jax.random.normal(k2, (2 * D, H), dtype=jnp.float32) * 0.02      # dense_1.weight
    b1 = jax.random.normal(k3, (2 * D,), dtype=jnp.float32) * 0.02        # dense_1.bias
    w2 = jax.random.normal(k4, (2 * E, 2 * D), dtype=jnp.float32) * 0.02  # dense_2.weight
    b2 = jax.random.normal(k5, (2 * E,), dtype=jnp.float32) * 0.02        # dense_2.bias
    # attention mask: second example has 2 padded positions
    attn = jnp.ones((B, S), jnp.float32).at[1, 6:].set(0.0)

    # f32 path: strict correctness check against the module-faithful reference.
    out = efficient_global_pointer_forward(x, attn, w1, b1, w2, b2, E, D)
    out = jax.block_until_ready(out)
    ref = efficient_global_pointer_reference(x, attn, w1, b1, w2, b2, E, D)
    np.testing.assert_allclose(np.asarray(out), np.asarray(ref), rtol=1e-3, atol=1e-3)

    # bf16 compute + bf16 output path (the recommended fast configuration): compile & run.
    out_bf16 = efficient_global_pointer_forward(x, attn, w1, b1, w2, b2, E, D,
                                                compute_dtype=jnp.bfloat16,
                                                out_dtype=jnp.bfloat16)
    jax.block_until_ready(out_bf16)

    print("KERNEL_OK")
</pallas_src>

<mosaic_0001>
module attributes {stable_mosaic.version = 11 : i64} {
  func.func @_egp_kernel(%arg0: i32, %arg1: i32, %arg2: memref<1x8x32xf32, #tpu.memory_space<vmem>>, %arg3: memref<32x16xf32, #tpu.memory_space<vmem>>, %arg4: memref<1x16xf32, #tpu.memory_space<vmem>>, %arg5: memref<1x3x16xf32, #tpu.memory_space<vmem>>, %arg6: memref<1x3x1xf32, #tpu.memory_space<vmem>>, %arg7: memref<1x3x16xf32, #tpu.memory_space<vmem>>, %arg8: memref<1x1x3xf32, #tpu.memory_space<vmem>>, %arg9: memref<8x8xf32, #tpu.memory_space<vmem>>, %arg10: memref<8x8xf32, #tpu.memory_space<vmem>>, %arg11: memref<1x1x8xf32, #tpu.memory_space<vmem>>, %arg12: memref<1x3x8x8xf32, #tpu.memory_space<vmem>>, %arg13: memref<8x16xf32, #tpu.memory_space<vmem>>, %arg14: memref<8x8xf32, #tpu.memory_space<vmem>>) attributes {dimension_semantics = [#tpu.dimension_semantics<parallel>, #tpu.dimension_semantics<arbitrary>], iteration_bounds = array<i64: 2, 1>, scalar_prefetch = 0 : i64, scratch_operands = 2 : i64, tpu.core_type = #tpu.core_type<tc>, window_params = [{transform_indices = @transform_0, window_bounds = array<i64: 1, 8, 32>}, {pipeline_mode = #tpu.pipeline_mode<synchronous>, transform_indices = @transform_1, window_bounds = array<i64: 32, 16>}, {pipeline_mode = #tpu.pipeline_mode<synchronous>, transform_indices = @transform_2, window_bounds = array<i64: 1, 16>}, {transform_indices = @transform_3, window_bounds = array<i64: 1, 3, 16>}, {transform_indices = @transform_4, window_bounds = array<i64: 1, 3, 1>}, {transform_indices = @transform_5, window_bounds = array<i64: 1, 3, 16>}, {transform_indices = @transform_6, window_bounds = array<i64: 1, 1, 3>}, {pipeline_mode = #tpu.pipeline_mode<synchronous>, transform_indices = @transform_7, window_bounds = array<i64: 8, 8>}, {pipeline_mode = #tpu.pipeline_mode<synchronous>, transform_indices = @transform_8, window_bounds = array<i64: 8, 8>}, {transform_indices = @transform_9, window_bounds = array<i64: 1, 1, 8>}, {transform_indices = @transform_10, window_bounds = array<i64: 1, 3, 8, 8>}]} {
    %c0 = arith.constant 0 : index
    %c0_0 = arith.constant 0 : index
    %c0_1 = arith.constant 0 : index
    %0 = vector.load %arg11[%c0, %c0_0, %c0_1] : memref<1x1x8xf32, #tpu.memory_space<vmem>>, vector<1x1x8xf32>
    %1 = vector.shape_cast %0 : vector<1x1x8xf32> to vector<1x8xf32>
    %c0_i32 = arith.constant 0 : i32
    %2 = arith.cmpi eq, %arg1, %c0_i32 : i32
    %3 = arith.extui %2 : i1 to i32
    %c0_i32_2 = arith.constant 0 : i32
    %4 = arith.cmpi ne, %3, %c0_i32_2 : i32
    scf.if %4 {
      %c0_32 = arith.constant 0 : index
      %c0_33 = arith.constant 0 : index
      %c0_34 = arith.constant 0 : index
      %54 = vector.load %arg2[%c0_32, %c0_33, %c0_34] : memref<1x8x32xf32, #tpu.memory_space<vmem>>, vector<1x8x32xf32>
      %55 = vector.shape_cast %54 : vector<1x8x32xf32> to vector<8x32xf32>
      %c0_35 = arith.constant 0 : index
      %c0_36 = arith.constant 0 : index
      %56 = vector.load %arg3[%c0_35, %c0_36] : memref<32x16xf32, #tpu.memory_space<vmem>>, vector<32x16xf32>
      %cst_37 = arith.constant dense<0.000000e+00> : vector<8x16xf32>
      %57 = tpu.matmul %55, %56, %cst_37 {dimension_numbers = #tpu.dot_dimension_numbers<[1], [0], [0], [1], [0, 0, 1, 1], [], []>} : vector<8x32xf32>, vector<32x16xf32>, vector<8x16xf32> -> vector<8x16xf32>
      %c0_38 = arith.constant 0 : index
      %c0_39 = arith.constant 0 : index
      %58 = vector.load %arg4[%c0_38, %c0_39] : memref<1x16xf32, #tpu.memory_space<vmem>>, vector<1x16xf32>
      %59 = vector.broadcast %58 : vector<1x16xf32> to vector<8x16xf32>
      %60 = arith.addf %57, %59 : vector<8x16xf32>
      %c0_40 = arith.constant 0 : index
      %c0_41 = arith.constant 0 : index
      %61 = vector.load %arg13[%c0_40, %c0_41] : memref<8x16xf32, #tpu.memory_space<vmem>>, vector<8x16xf32>
      tpu.vector_store %arg13[%c0_40, %c0_41], %60 {strides = array<i32>} : memref<8x16xf32, #tpu.memory_space<vmem>>, vector<8x16xf32>,
      %62 = vector.extract_strided_slice %60 {offsets = [0, 0], sizes = [8, 4], strides = [1, 1]} : vector<8x16xf32> to vector<8x4xf32>
      %63 = vector.extract_strided_slice %60 {offsets = [0, 4], sizes = [8, 4], strides = [1, 1]} : vector<8x16xf32> to vector<8x4xf32>
      %64 = vector.extract_strided_slice %60 {offsets = [0, 8], sizes = [8, 4], strides = [1, 1]} : vector<8x16xf32> to vector<8x4xf32>
      %65 = vector.extract_strided_slice %60 {offsets = [0, 12], sizes = [8, 4], strides = [1, 1]} : vector<8x16xf32> to vector<8x4xf32>
      %c0_42 = arith.constant 0 : index
      %c0_43 = arith.constant 0 : index
      %66 = vector.load %arg9[%c0_42, %c0_43] : memref<8x8xf32, #tpu.memory_space<vmem>>, vector<8x4xf32>
      %c0_44 = arith.constant 0 : index
      %c4 = arith.constant 4 : index
      %67 = vector.load %arg9[%c0_44, %c4] : memref<8x8xf32, #tpu.memory_space<vmem>>, vector<8x4xf32>
      %c0_45 = arith.constant 0 : index
      %c0_46 = arith.constant 0 : index
      %68 = vector.load %arg10[%c0_45, %c0_46] : memref<8x8xf32, #tpu.memory_space<vmem>>, vector<8x4xf32>
      %c0_47 = arith.constant 0 : index
      %c4_48 = arith.constant 4 : index
      %69 = vector.load %arg10[%c0_47, %c4_48] : memref<8x8xf32, #tpu.memory_space<vmem>>, vector<8x4xf32>
      %70 = arith.mulf %62, %66 : vector<8x4xf32>
      %71 = arith.mulf %63, %68 : vector<8x4xf32>
      %72 = arith.subf %70, %71 : vector<8x4xf32>
      %73 = arith.mulf %63, %67 : vector<8x4xf32>
      %74 = arith.mulf %62, %69 : vector<8x4xf32>
      %75 = arith.addf %73, %74 : vector<8x4xf32>
      %76 = tpu.concatenate %72, %75 in 1 : vector<8x4xf32>, vector<8x4xf32> -> vector<8x8xf32>
      %cst_49 = arith.constant 0.353553385 : f32
      %77 = vector.broadcast %cst_49 : f32 to vector<8x8xf32>
      %78 = arith.mulf %76, %77 : vector<8x8xf32>
      %79 = arith.mulf %64, %66 : vector<8x4xf32>
      %80 = arith.mulf %65, %68 : vector<8x4xf32>
      %81 = arith.subf %79, %80 : vector<8x4xf32>
      %82 = arith.mulf %65, %67 : vector<8x4xf32>
      %83 = arith.mulf %64, %69 : vector<8x4xf32>
      %84 = arith.addf %82, %83 : vector<8x4xf32>
      %85 = tpu.concatenate %81, %84 in 1 : vector<8x4xf32>, vector<8x4xf32> -> vector<8x8xf32>
      %cst_50 = arith.constant dense<0.000000e+00> : vector<8x8xf32>
      %86 = tpu.matmul %78, %85, %cst_50 {dimension_numbers = #tpu.dot_dimension_numbers<[1], [1], [0], [0], [0, 0, 1, 0], [], []>} : vector<8x8xf32>, vector<8x8xf32>, vector<8x8xf32> -> vector<8x8xf32>
      %87 = tpu.iota {dimensions = array<i32: 0>} : vector<8x8xi32>
      %88 = tpu.iota {dimensions = array<i32: 1>} : vector<8x8xi32>
      %89 = arith.cmpi sgt, %87, %88 : vector<8x8xi32>
      %cst_51 = arith.constant -9.99999995E+11 : f32
      %cst_52 = arith.constant 0.000000e+00 : f32
      %90 = vector.broadcast %cst_51 : f32 to vector<8x8xf32>
      %91 = vector.broadcast %cst_52 : f32 to vector<8x8xf32>
      %92 = arith.select %89, %90, %91 : vector<8x8xi1>, vector<8x8xf32>
      %93 = vector.broadcast %1 : vector<1x8xf32> to vector<8x8xf32>
      %94 = arith.mulf %86, %93 : vector<8x8xf32>
      %cst_53 = arith.constant 1.000000e+00 : f32
      %95 = vector.broadcast %cst_53 : f32 to vector<1x8xf32>
      %96 = arith.subf %1, %95 : vector<1x8xf32>
      %cst_54 = arith.constant 9.99999995E+11 : f32
      %97 = vector.broadcast %cst_54 : f32 to vector<1x8xf32>
      %98 = arith.mulf %96, %97 : vector<1x8xf32>
      %99 = vector.broadcast %98 : vector<1x8xf32> to vector<8x8xf32>
      %100 = arith.addf %94, %99 : vector<8x8xf32>
      %101 = arith.addf %100, %92 : vector<8x8xf32>
      %c0_55 = arith.constant 0 : index
      %c0_56 = arith.constant 0 : index
      %102 = vector.load %arg14[%c0_55, %c0_56] : memref<8x8xf32, #tpu.memory_space<vmem>>, vector<8x8xf32>
      tpu.vector_store %arg14[%c0_55, %c0_56], %101 {strides = array<i32>} : memref<8x8xf32, #tpu.memory_space<vmem>>, vector<8x8xf32>,
    } else {
    }
    %c0_3 = arith.constant 0 : index
    %c0_4 = arith.constant 0 : index
    %5 = vector.load %arg13[%c0_3, %c0_4] : memref<8x16xf32, #tpu.memory_space<vmem>>, vector<8x16xf32>
    %c0_5 = arith.constant 0 : index
    %c0_6 = arith.constant 0 : index
    %c0_7 = arith.constant 0 : index
    %6 = vector.load %arg5[%c0_5, %c0_6, %c0_7] : memref<1x3x16xf32, #tpu.memory_space<vmem>>, vector<1x3x16xf32>
    %7 = vector.shape_cast %6 : vector<1x3x16xf32> to vector<3x16xf32>
    %c0_8 = arith.constant 0 : index
    %c0_9 = arith.constant 0 : index
    %c0_10 = arith.constant 0 : index
    %8 = vector.load %arg7[%c0_8, %c0_9, %c0_10] : memref<1x3x16xf32, #tpu.memory_space<vmem>>, vector<1x3x16xf32>
    %9 = vector.shape_cast %8 : vector<1x3x16xf32> to vector<3x16xf32>
    %cst = arith.constant dense<0.000000e+00> : vector<3x8xf32>
    %10 = tpu.matmul %7, %5, %cst {dimension_numbers = #tpu.dot_dimension_numbers<[1], [1], [0], [0], [0, 0, 1, 0], [], []>} : vector<3x16xf32>, vector<8x16xf32>, vector<3x8xf32> -> vector<3x8xf32>
    %c0_11 = arith.constant 0 : index
    %c0_12 = arith.constant 0 : index
    %c0_13 = arith.constant 0 : index
    %11 = vector.load %arg6[%c0_11, %c0_12, %c0_13] : memref<1x3x1xf32, #tpu.memory_space<vmem>>, vector<1x3x1xf32>
    %12 = vector.shape_cast %11 : vector<1x3x1xf32> to vector<3x1xf32>
    %13 = vector.broadcast %12 : vector<3x1xf32> to vector<3x8xf32>
    %14 = arith.addf %10, %13 : vector<3x8xf32>
    %cst_14 = arith.constant 5.000000e-01 : f32
    %15 = vector.broadcast %cst_14 : f32 to vector<3x8xf32>
    %16 = arith.mulf %15, %14 : vector<3x8xf32>
    %17 = vector.broadcast %1 : vector<1x8xf32> to vector<3x8xf32>
    %18 = arith.mulf %16, %17 : vector<3x8xf32>
    %cst_15 = arith.constant dense<0.000000e+00> : vector<8x3xf32>
    %19 = tpu.matmul %5, %9, %cst_15 {dimension_numbers = #tpu.dot_dimension_numbers<[1], [1], [0], [0], [0, 0, 1, 0], [], []>} : vector<8x16xf32>, vector<3x16xf32>, vector<8x3xf32> -> vector<8x3xf32>
    %c0_16 = arith.constant 0 : index
    %c0_17 = arith.constant 0 : index
    %c0_18 = arith.constant 0 : index
    %20 = vector.load %arg8[%c0_16, %c0_17, %c0_18] : memref<1x1x3xf32, #tpu.memory_space<vmem>>, vector<1x1x3xf32>
    %21 = vector.shape_cast %20 : vector<1x1x3xf32> to vector<1x3xf32>
    %22 = vector.broadcast %21 : vector<1x3xf32> to vector<8x3xf32>
    %23 = arith.addf %19, %22 : vector<8x3xf32>
    %cst_19 = arith.constant 5.000000e-01 : f32
    %24 = vector.broadcast %cst_19 : f32 to vector<8x3xf32>
    %25 = arith.mulf %24, %23 : vector<8x3xf32>
    %c0_20 = arith.constant 0 : index
    %c0_21 = arith.constant 0 : index
    %26 = vector.load %arg14[%c0_20, %c0_21] : memref<8x8xf32, #tpu.memory_space<vmem>>, vector<8x8xf32>
    %27 = vector.extract_strided_slice %25 {offsets = [0, 0], sizes = [8, 1], strides = [1, 1]} : vector<8x3xf32> to vector<8x1xf32>
    %28 = vector.broadcast %27 : vector<8x1xf32> to vector<8x8xf32>
    %29 = arith.addf %26, %28 : vector<8x8xf32>
    %30 = vector.extract_strided_slice %18 {offsets = [0, 0], sizes = [1, 8], strides = [1, 1]} : vector<3x8xf32> to vector<1x8xf32>
    %31 = vector.broadcast %30 : vector<1x8xf32> to vector<8x8xf32>
    %32 = arith.addf %29, %31 : vector<8x8xf32>
    %c0_22 = arith.constant 0 : index
    %c0_23 = arith.constant 0 : index
    %c0_24 = arith.constant 0 : index
    %c0_25 = arith.constant 0 : index
    %33 = vector.load %arg12[%c0_22, %c0_23, %c0_24, %c0_25] : memref<1x3x8x8xf32, #tpu.memory_space<vmem>>, vector<1x1x8x8xf32>
    %34 = vector.shape_cast %33 : vector<1x1x8x8xf32> to vector<8x8xf32>
    %35 = vector.shape_cast %32 : vector<8x8xf32> to vector<1x1x8x8xf32>
    tpu.vector_store %arg12[%c0_22, %c0_23, %c0_24, %c0_25], %35 {strides = array<i32>} : memref<1x3x8x8xf32, #tpu.memory_space<vmem>>, vector<1x1x8x8xf32>,
    %36 = vector.extract_strided_slice %25 {offsets = [0, 1], sizes = [8, 1], strides = [1, 1]} : vector<8x3xf32> to vector<8x1xf32>
    %37 = vector.broadcast %36 : vector<8x1xf32> to vector<8x8xf32>
    %38 = arith.addf %26, %37 : vector<8x8xf32>
    %39 = vector.extract_strided_slice %18 {offsets = [1, 0], sizes = [1, 8], strides = [1, 1]} : vector<3x8xf32> to vector<1x8xf32>
    %40 = vector.broadcast %39 : vector<1x8xf32> to vector<8x8xf32>
    %41 = arith.addf %38, %40 : vector<8x8xf32>
    %c0_26 = arith.constant 0 : index
    %c1 = arith.constant 1 : index
    %c0_27 = arith.constant 0 : index
    %c0_28 = arith.constant 0 : index
    %42 = vector.load %arg12[%c0_26, %c1, %c0_27, %c0_28] : memref<1x3x8x8xf32, #tpu.memory_space<vmem>>, vector<1x1x8x8xf32>
    %43 = vector.shape_cast %42 : vector<1x1x8x8xf32> to vector<8x8xf32>
    %44 = vector.shape_cast %41 : vector<8x8xf32> to vector<1x1x8x8xf32>
    tpu.vector_store %arg12[%c0_26, %c1, %c0_27, %c0_28], %44 {strides = array<i32>} : memref<1x3x8x8xf32, #tpu.memory_space<vmem>>, vector<1x1x8x8xf32>,
    %45 = vector.extract_strided_slice %25 {offsets = [0, 2], sizes = [8, 1], strides = [1, 1]} : vector<8x3xf32> to vector<8x1xf32>
    %46 = vector.broadcast %45 : vector<8x1xf32> to vector<8x8xf32>
    %47 = arith.addf %26, %46 : vector<8x8xf32>
    %48 = vector.extract_strided_slice %18 {offsets = [2, 0], sizes = [1, 8], strides = [1, 1]} : vector<3x8xf32> to vector<1x8xf32>
    %49 = vector.broadcast %48 : vector<1x8xf32> to vector<8x8xf32>
    %50 = arith.addf %47, %49 : vector<8x8xf32>
    %c0_29 = arith.constant 0 : index
    %c2 = arith.constant 2 : index
    %c0_30 = arith.constant 0 : index
    %c0_31 = arith.constant 0 : index
    %51 = vector.load %arg12[%c0_29, %c2, %c0_30, %c0_31] : memref<1x3x8x8xf32, #tpu.memory_space<vmem>>, vector<1x1x8x8xf32>
    %52 = vector.shape_cast %51 : vector<1x1x8x8xf32> to vector<8x8xf32>
    %53 = vector.shape_cast %50 : vector<8x8xf32> to vector<1x1x8x8xf32>
    tpu.vector_store %arg12[%c0_29, %c2, %c0_30, %c0_31], %53 {strides = array<i32>} : memref<1x3x8x8xf32, #tpu.memory_space<vmem>>, vector<1x1x8x8xf32>,
    return
  }
  func.func @transform_0(%arg0: i32, %arg1: i32) -> (i32, i32, i32) {
    %c0_i32 = arith.constant 0 : i32
    %c0_i32_0 = arith.constant 0 : i32
    %c0_i32_1 = arith.constant 0 : i32
    return %arg0, %c0_i32, %c0_i32_0 : i32, i32, i32
  }
  func.func @transform_1(%arg0: i32, %arg1: i32) -> (i32, i32) {
    %c0_i32 = arith.constant 0 : i32
    %c0_i32_0 = arith.constant 0 : i32
    %c0_i32_1 = arith.constant 0 : i32
    return %c0_i32, %c0_i32_0 : i32, i32
  }
  func.func @transform_2(%arg0: i32, %arg1: i32) -> (i32, i32) {
    %c0_i32 = arith.constant 0 : i32
    %c0_i32_0 = arith.constant 0 : i32
    %c0_i32_1 = arith.constant 0 : i32
    return %c0_i32, %c0_i32_0 : i32, i32
  }
  func.func @transform_3(%arg0: i32, %arg1: i32) -> (i32, i32, i32) {
    %c0_i32 = arith.constant 0 : i32
    %c0_i32_0 = arith.constant 0 : i32
    %c0_i32_1 = arith.constant 0 : i32
    return %arg1, %c0_i32, %c0_i32_0 : i32, i32, i32
  }
  func.func @transform_4(%arg0: i32, %arg1: i32) -> (i32, i32, i32) {
    %c0_i32 = arith.constant 0 : i32
    %c0_i32_0 = arith.constant 0 : i32
    %c0_i32_1 = arith.constant 0 : i32
    return %arg1, %c0_i32, %c0_i32_0 : i32, i32, i32
  }
  func.func @transform_5(%arg0: i32, %arg1: i32) -> (i32, i32, i32) {
    %c0_i32 = arith.constant 0 : i32
    %c0_i32_0 = arith.constant 0 : i32
    %c0_i32_1 = arith.constant 0 : i32
    return %arg1, %c0_i32, %c0_i32_0 : i32, i32, i32
  }
  func.func @transform_6(%arg0: i32, %arg1: i32) -> (i32, i32, i32) {
    %c0_i32 = arith.constant 0 : i32
    %c0_i32_0 = arith.constant 0 : i32
    %c0_i32_1 = arith.constant 0 : i32
    return %arg1, %c0_i32, %c0_i32_0 : i32, i32, i32
  }
  func.func @transform_7(%arg0: i32, %arg1: i32) -> (i32, i32) {
    %c0_i32 = arith.constant 0 : i32
    %c0_i32_0 = arith.constant 0 : i32
    %c0_i32_1 = arith.constant 0 : i32
    return %c0_i32, %c0_i32_0 : i32, i32
  }
  func.func @transform_8(%arg0: i32, %arg1: i32) -> (i32, i32) {
    %c0_i32 = arith.constant 0 : i32
    %c0_i32_0 = arith.constant 0 : i32
    %c0_i32_1 = arith.constant 0 : i32
    return %c0_i32, %c0_i32_0 : i32, i32
  }
  func.func @transform_9(%arg0: i32, %arg1: i32) -> (i32, i32, i32) {
    %c0_i32 = arith.constant 0 : i32
    %c0_i32_0 = arith.constant 0 : i32
    %c0_i32_1 = arith.constant 0 : i32
    return %arg0, %c0_i32, %c0_i32_0 : i32, i32, i32
  }
  func.func @transform_10(%arg0: i32, %arg1: i32) -> (i32, i32, i32, i32) {
    %c0_i32 = arith.constant 0 : i32
    %c0_i32_0 = arith.constant 0 : i32
    %c0_i32_1 = arith.constant 0 : i32
    return %arg0, %arg1, %c0_i32, %c0_i32_0 : i32, i32, i32, i32
  }
}

</mosaic_0001>

<bundles_post_ra>
// kernel: tpu_custom_call.1
= control target key start
LH: loop header
LB: loop body
LE: loop exit
PB: predicated region body
PF: predicated region fallthrough
CT: control target
= control target key end

     0   :  { %15 = vsyncpa [#allocation5], 0  ;;  %s1543_s0 = inlined_call_operand.vmem [shape: f32[2,8,32], index: 0, kind: input, shape index: {}]   ;;  %s1544_s1 = inlined_call_operand.vmem [shape: f32[32,16], index: 1, kind: input, shape index: {}]   ;;  %s1545_s2 = inlined_call_operand.vmem [shape: f32[1,16], index: 2, kind: input, shape index: {}]   ;;  %s1546_s3 = inlined_call_operand.vmem [shape: f32[1,3,16], index: 3, kind: input, shape index: {}]   ;;  %s1547_s4 = inlined_call_operand.vmem [shape: f32[1,3,1], index: 4, kind: input, shape index: {}]   ;;  %s1548_s5 = inlined_call_operand.vmem [shape: f32[1,3,16], index: 5, kind: input, shape index: {}]   ;;  %s1549_s6 = inlined_call_operand.vmem [shape: f32[1,1,3], index: 6, kind: input, shape index: {}]   ;;  %s1550_s7 = inlined_call_operand.vmem [shape: f32[8,8], index: 7, kind: input, shape index: {}]   ;;  %s1551_s8 = inlined_call_operand.vmem [shape: f32[8,8], index: 8, kind: input, shape index: {}]   ;;  %s1552_s9 = inlined_call_operand.vmem [shape: f32[2,1,8], index: 9, kind: input, shape index: {}]   ;;  %s1553_s10 = inlined_call_operand.hbm [shape: f32[2,3,8,8], index: 10, kind: output, shape index: {}]  }
   0x1   :  { %17 = vsyncpa [#allocation5 + $0x1], 0  ;;  %s1352_s13 = smov 0   ;;  %s1354_s14 = smov 0  }
   0x2   :  { %s1356_s15 = smov 0   ;;  %s1358_s16 = smov 0  }
   0x3   :  { %s1360_s17 = smov 0   ;;  %s1362_s18 = smov 0  }
   0x4 LB: > { %s1063_s19 = sadd.s32 4294967295, %s1282_s18   ;;  %s1064_s20 = sadd.s32 4294967294, %s1282_s18   ;;  %s1282_s18 = sphi %s1362_s18, %s23_s18   ;;  %s1278_s17 = sphi %s1360_s17, %s1562_s17   ;;  %s1274_s16 = sphi %s1358_s16, %s1561_s16   ;;  %s1270_s15 = sphi %s1356_s15, %s1560_s15   ;;  %s1266_s14 = sphi %s1354_s14, %s1559_s14   ;;  %s1262_s13 = sphi %s1352_s13, %s1558_s13  }
   0x5   : > { %s35_s21 = sadd.s32 1, %s1278_s17  ;;  %s284_s22 = sadd.s32 1, %s1270_s15 }
   0x6   : > { %p37_p0 = scmp.ge.s32.totalorder %s35_s21, 2  ;;  %p294_p1 = scmp.ne.s32.totalorder %s1270_s15, %s1266_s14 }
   0x7   : > { %p295_p2 = scmp.eq.s32.totalorder %s1063_s19, 1  ;;  %p300_p3 = scmp.ne.s32.totalorder %s1266_s14, %s1262_s13 }
   0x8   : > { %s1564_s21 = smov (%p37_p0, %s35_s21), 0  ;;  %p301_p5 = scmp.eq.s32.totalorder %s1064_s20, 1 }
   0x9   : > { %p1392_p4 = por %p295_p2, %p294_p1  ;;  %s279_s24 = ssub.s32 %s1278_s17, %s1564_s21 }
   0xa   : > { %p1071_p6 = scmp.ge.s32.totalorder %s1282_s18, 1  ;;  %p282_p7 = scmp.eq.s32.totalorder %s279_s24, 0 }
   0xb   : > { %p1399_p8 = por %p301_p5, %p300_p3  ;;  %p371_p9 = scmp.lt.s32.totalorder %s1282_s18, 3 }
   0xc   : > { %s1405_s26 = scalar_select %p282_p7, %s1270_s15, %s284_s22  }
   0xd   : > { %p372_p10 = pnand %p1071_p6, %p371_p9 }
   0xe   : > { %v455_v0 = vld [vmem:[%s1544_s1] sm:$0xff] (!%p372_p10)  ;;  %v456_v1 = vld [vmem:[%s1544_s1 + $0x8] sm:$0xff] (!%p372_p10)  ;;  %v457_v2 = vld [vmem:[%s1544_s1 + $0x10] sm:$0xff] (!%p372_p10)  ;;  %v1284_v3 = vmov (!%p372_p10), 0.0|0.0   ;;  %vm1285_vm0 = vmmov (!%p372_p10), 0   ;;  %v1286_v6 = vmov (!%p372_p10), 0.0   ;;  %v671_v49 = vlaneseq (!%p372_p10) }
   0xf   : > { %375 = sbr.rel (%p372_p10) target bundleno = 725 (0x2d5), region = 60  ;;  %1125 = vmatprep.subr.bf16.mxu0 (!%p372_p10), %v1284_v3  ;;  %v1126_v4 = vpack.c.bf16 (!%p372_p10), %v456_v1, %v455_v0  ;;  %v458_v5 = vld [vmem:[%s1544_s1 + $0x18] sm:$0xff] (!%p372_p10)  ;;  %1107 = vmatprep.mubr.msk.f32.mxu0 (!%p372_p10), %vm1285_vm0, %v1286_v6  ;;  %p426_p11 = scmp.lt.s32.totalorder (!%p372_p10), %s1274_s16, 1  ;;  %v543_v7 = vld [vmem:[%s1551_s8] sm:$0xff] (!%p372_p10)  ;;  %vm466_vm1 = vcmask (!%p372_p10), 261120   ;;  %vm540_vm2 = vcmask (!%p372_p10), 130048  }
  0x10   : > { %v1428_v8 = vld [vmem:[%s1550_s7] sm:$0xff] (!%p372_p10)  ;;  %s1287_s29 = smov (!%p372_p10), 4   ;;  %1110 = vmatprep.subr.mxu1 (!%p372_p10), %v1286_v6  ;;  %v1129_v9 = vpack.c.bf16 (!%p372_p10), %v458_v5, %v457_v2  ;;  %s1554_s11 = smov (!%p372_p10), 8   ;;  %1112 = vmatprep.mubr.msk.f32.mxu1 (!%p372_p10), %vm1285_vm0, %v1286_v6  ;;  %v1291_v13 = vmov (!%p372_p10), 0   ;;  %v1293_v31 = vmov (!%p372_p10), 2   ;;  %v1294_v40 = vmov (!%p372_p10), 1  }
  0x11   : > { %546 = vrot.lane.b32.xlu0 (!%p372_p10), %v543_v7, %s1287_s29  ;;  %1127 = vmatpush3.bf16.msra.mxu0 (!%p372_p10), %v1126_v4  ;;  %s1289_s24 = smov (!%p372_p10), 12   ;;  %s1290_s27 = smov (!%p372_p10), 124   ;;  %v697_v11 = vld [vmem:[%s1548_s5] sm:$0x7] (!%p372_p10)  ;;  %vm564_vm3 = vcmask (!%p372_p10), 31744   ;;  %vm594_vm4 = vcmask (!%p372_p10), 64512  }
  0x12   : > { %568 = vrot.lane.b32.xlu1 (!%p372_p10), %v1428_v8, %s1554_s11  ;;  %1128 = vmatprep.subr.bf16.mxu0 (!%p372_p10), %v1284_v3  ;;  %v1073_v15 = vld [vmem:[%s1545_s2] ss:$0 sm:$0xff] (!%p372_p10)  ;;  %s1292_s11 = smov (!%p372_p10), 120   ;;  %v672_v51 = vshrl.u32 (!%p372_p10), %v671_v49, 7  ;;  %v674_v54 = vand.u32 (!%p372_p10), 127, %v671_v49 }
  0x13   : > { %1200 = vset.pattern.permute.xlu0 (!%p372_p10), %v1291_v13  ;;  %1201 = vset.pattern.permute.xlu1 (!%p372_p10), %v1291_v13  ;;  %v698_v30 = vld [vmem:[%s1547_s4] sm:$0x7] (!%p372_p10) }
  0x14   : > { %v1080_v32 = vld [vmem:[%s1549_s6] ss:$0 sm:$0xff] (!%p372_p10)  ;;  %v680_v53 = vsub.s32 (!%p372_p10), 0, %v672_v51  ;;  %vm675_vm5 = vcmp.gt.s32.totalorder (!%p372_p10), %v672_v51, %v674_v54 }
  0x15   : > { %572 = vrot.lane.b32.xlu0 (!%p372_p10), %v543_v7, %s1289_s24  ;;  %1130 = vmatpush3.bf16.msra.mxu0 (!%p372_p10), %v1129_v9  ;;  %v696_v48 = vld [vmem:[%s1546_s3] sm:$0x7] (!%p372_p10)  ;;  %v676_v61 = vsel (!%p372_p10), %vm675_vm5, -1e+12, %v1286_v6  ;;  %v903_v9 = vsub.s32 (!%p372_p10), 2, %v672_v51 }
  0x16   : > { %s1433_s30 = scalar_select %p426_p11, %s1274_s16, 1  ;;  %555 = vrot.lane.b32.xlu1 %v543_v7, %s1290_s27  ;;  %1120 = vmatprep.subr.mxu0 %v1286_v6 }
  0x18   : > { %s1072_s12 = sshll.u32 %s1433_s30, 3 }
  0x19   : > { %s429_s22 = scalar_lea.vmem %s1543_s0, %s1072_s12 }
  0x1a   : > { %v454_v10 = vld [vmem:[%s429_s22] sm:$0xff]  ;;  %s1132_s22 = smul.u32 384, %s1274_s16 }
  0x1b   : > { %1108 = vmatmul.mubr.msk.f32.vlgmr.msra.gmra.mrb[0].mxu0 %vm466_vm1, %v454_v10 }
  0x1c   : > { %1122 = vmatprep.mubr.msk.f32.mxu0 %vm1285_vm0, %v1286_v6  ;;  %s1487_s12 = scalar_lea.hbm %s1553_s10, %s1132_s22 }
  0x1e   : > { %1121 = vmatpush3.xpose.msk.msra.mxu0 %vm540_vm2, %v697_v11 }
  0x83   : > { %v547_v12 = vpop.permute.xlu0 %546 }
  0x84   : > { %v569_v14 = vpop.permute.xlu1 %568 }
  0x87   : > { %v573_v17 = vpop.permute.xlu0 %572 }
  0x88   : > { %v556_v22 = vpop.permute.xlu1 %555 }
  0xee   : > { %v536_v16 = vpop.f32.mrb[0].mxu0 }
  0xef   : > { %v537_v18 = vadd.f32 %v1073_v15, %v536_v16  ;;  %v1109_v19 = vpop.f32.mrb[1].mxu0 }
  0xf1   : > { %v575_v20 = vmul.f32 %v573_v17, %v537_v18  ;;  %v549_v21 = vmul.f32 %v547_v12, %v537_v18  ;;  %541 = vst.msk [vmem:[#allocation2] sm:$0xff] %vm540_vm2, %v537_v18  ;;  %v558_v23 = vmul.f32 %v556_v22, %v537_v18  ;;  %v571_v25 = vmul.f32 %v569_v14, %v537_v18 }
  0xf2   : > { %v544_v39 = vmul.f32 %v1428_v8, %v537_v18  ;;  %v891_v8 = vsub.s32 1, %v672_v51 }
  0xf3   : > { %577 = vrot.lane.b32.xlu0 %v575_v20, %s1290_s27  ;;  %581 = vrot.lane.b32.xlu1 %v549_v21, %s1287_s29 }
  0xf7   : > { %551 = vrot.lane.b32.xlu0 %v549_v21, %s1290_s27  ;;  %560 = vrot.lane.b32.xlu1 %v558_v23, %s1287_s29 }
  0xf8   : > { %v695_v24 = vld [vmem:[#allocation2] sm:$0xff] }
  0xf9   : > { %1123 = vmatmul.mubr.msk.f32.vlgmr.msra.gmra.mrb[2].mxu0 %vm540_vm2, %v695_v24 }
 0x165   : > { %v578_v26 = vpop.permute.xlu0 %577  ;;  %v582_v27 = vpop.permute.xlu1 %581 }
 0x166   : > { %v580_v28 = vsub.f32 %v571_v25, %v578_v26  ;;  %v584_v29 = vadd.f32 %v582_v27, %v571_v25 }
 0x168   : > { %586 = vrot.lane.b32.xlu0 %v580_v28, %s1292_s11  ;;  %590 = vrot.lane.b32.xlu1 %v584_v29, %s1292_s11  ;;  %s447_s11 = scalar_lea.vmem %s1552_s9, %s1433_s30  ;;  %s423_s30 = sand.u32 1, %s1266_s14  }
 0x169   : > { %v552_v37 = vpop.permute.xlu0 %551  ;;  %v561_v38 = vpop.permute.xlu1 %560  ;;  %v449_v50 = vld [vmem:[%s447_s11] sm:$0x1]  ;;  %s1131_s20 = smul.u32 24, %s423_s30  ;;  %s1496_s16 = scalar_lea.sflag [#allocation5], %s423_s30 }
 0x16a   : > { %v554_v41 = vsub.f32 %v544_v39, %v552_v37  ;;  %v563_v42 = vadd.f32 %v561_v38, %v544_v39  ;;  %v1077_v52 = vadd.f32 -1.0, %v449_v50  ;;  %v681_v56 = vrot.slane %v449_v50, %v680_v53  ;;  %s1295_s11 = smov [#allocation4]  }
 0x16b   : > { %s425_s24 = scalar_lea.vmem [#allocation4], %s1131_s20  ;;  %s1208_s20 = sshll.u32 %s1295_s11, 4  ;;  %s1209_s20 = int_to_ptr.vmem [resolvable:$false] %s1208_s20 }
 0x16c   : > { %701 = vperm.xlu0 %1200, %v698_v30   ;;  %v565_v45 = vsel %vm564_vm3, %v554_v41, %v563_v42  ;;  %v685_v55 = vmul.f32 1e+12, %v1077_v52  ;;  %s924_s29 = sshll.u32 %s425_s24, 4  ;;  %s1210_s22 = scalar_lea.vmem %s1209_s20, 768  ;;  %s1489_s29 = int_to_ptr.vmem [resolvable:$true] %s924_s29 }
 0x16d   : > { %v566_v47 = vmul.f32 0.35355338, %v565_v45  ;;  %s1204_s19 = scalar_lea.vmem %s1489_s29, 384  ;;  %p1211_p1 = scmp.lt.s32.totalorder %s1489_s29, %s1209_s20 }
 0x16e   : > { %v690_v57 = vrot.slane %v685_v55, %v680_v53  ;;  %p1205_p12 = scmp.ne.s32.totalorder %s1489_s29, %s1204_s19  ;;  %p1212_p2 = scmp.lt.s32.totalorder %s1210_s22, %s1204_s19 }
 0x170   : > { %1203 = vset.pattern.permute.xlu0 %v1293_v31  ;;  %p1206_p13 = pnand %p1205_p12, %p1392_p4  ;;  %p1213_p3 = por %p1212_p2, %p1211_p1 }
 0x172   : > { %p1207_p0 = pneg %p1206_p13 }
 0x174   : > { %p1214_p5 = pnand %p1213_p3, %p1207_p0 }
 0x1cc   : > { %v865_v33 = vpop.f32.mrb[2].mxu0 }
 0x1cd   : > { %v866_v34 = vadd.f32 %v1080_v32, %v865_v33  ;;  %v1124_v35 = vpop.f32.mrb[3].mxu0 }
 0x1cf   : > { %v869_v36 = vmul.f32 0.5, %v866_v34 }
 0x1d1   : > { %897 = vperm.xlu0 %1203, %v869_v36   ;;  %873 = vperm.xlu1 %1201, %v869_v36  }
 0x1d5   : > { %1202 = vset.pattern.permute.xlu1 %v1294_v40 }
 0x1d6   : > { %885 = vperm.xlu1 %1202, %v869_v36  }
 0x1da   : > { %v587_v43 = vpop.permute.xlu0 %586  ;;  %v591_v44 = vpop.permute.xlu1 %590 }
 0x1db   : > { %v593_v46 = vsel %vm564_vm3, %v587_v43, %v591_v44 }
 0x1dc   : > { %1111 = vmatpush3.xpose.msk.msra.mxu1 %vm594_vm4, %v593_v46 }
 0x1dd   : > { %1115 = vmatprep.subr.mxu1 %v1286_v6 }
 0x1df   : > { %1113 = vmatmul.mubr.msk.f32.vlgmr.msra.gmra.mrb[0].mxu1 %vm594_vm4, %v566_v47 }
 0x1e0   : > { %1116 = vmatpush3.xpose.msk.msra.mxu1 %vm540_vm2, %v695_v24  ;;  %1117 = vmatprep.mubr.msk.f32.mxu1 %vm1285_vm0, %v1286_v6 }
 0x1e3   : > { %1118 = vmatmul.mubr.msk.f32.vlgmr.msra.gmra.mrb[2].mxu1 %vm540_vm2, %v696_v48 }
 0x1eb   : > { %v702_v63 = vpop.permute.xlu0 %701 }
 0x250   : > { %v874_v5 = vpop.permute.xlu1 %873  ;;  %v898_v12 = vpop.permute.xlu0 %897 }
 0x255   : > { %v886_v13 = vpop.permute.xlu1 %885 }
 0x2b2   : > { %v667_v58 = vpop.f32.mrb[0].mxu1 }
 0x2b3   : > { %v683_v59 = vmul.f32 %v681_v56, %v667_v58  ;;  %v1114_v60 = vpop.f32.mrb[1].mxu1 }
 0x2b5   : > { %v692_v62 = vadd.f32 %v690_v57, %v683_v59 }
 0x2b6   : > { %v777_v0 = vpop.f32.mrb[2].mxu1 }
 0x2b7   : > { %v693_v1 = vadd.f32 %v692_v62, %v676_v61  ;;  %v778_v2 = vadd.f32 %v777_v0, %v702_v63  ;;  %v1119_v3 = vpop.f32.mrb[3].mxu1 }
 0x2b9   : > { %694 = vst.msk [vmem:[#allocation3] sm:$0xff] %vm594_vm4, %v693_v1  ;;  %v781_v4 = vmul.f32 0.5, %v778_v2 }
 0x2bb   : > { %v788_v7 = vmul.f32 %v781_v4, %v681_v56 }
 0x2bd   : > { %v880_v10 = vrot.slane %v788_v7, %v680_v53  ;;  %v892_v11 = vrot.slane %v788_v7, %v891_v8  ;;  %v904_v6 = vrot.slane %v788_v7, %v903_v9 }
 0x2c0   : > { %v870_v14 = vld [vmem:[#allocation3] sm:$0xff] }
 0x2c1   : > { %v876_v15 = vadd.f32 %v874_v5, %v870_v14  ;;  %v888_v16 = vadd.f32 %v886_v13, %v870_v14  ;;  %v900_v17 = vadd.f32 %v898_v12, %v870_v14 }
 0x2c3   : > { %v881_v18 = vadd.f32 %v880_v10, %v876_v15  ;;  %v893_v19 = vadd.f32 %v892_v11, %v888_v16  ;;  %v905_v20 = vadd.f32 %v904_v6, %v900_v17 }
 0x2c5   : > { %883 = vst.msk [vmem:[%s425_s24] sm:$0xff] %vm594_vm4, %v881_v18  ;;  %1083 = vst.msk [vmem:[%s425_s24 + $0x8] sm:$0xff] %vm594_vm4, %v893_v19 }
 0x2c6   : > { %1084 = vst.msk [vmem:[%s425_s24 + $0x10] sm:$0xff] %vm594_vm4, %v905_v20 }
 0x2c7   : > { %1217 = shalt.err (!%p1214_p5)
}
 0x2c8   : > { %s1218_s30 = scalar_lea.hbm %s1487_s12, 384  ;;  %s1222_s28 = scalar_lea.hbm %s1553_s10, 768 }
 0x2c9   : > { %p1219_p6 = scmp.ne.s32.totalorder %s1487_s12, %s1218_s30  ;;  %p1223_p10 = scmp.lt.u32.totalorder %s1487_s12, %s1553_s10 }
 0x2ca   : > { %p1224_p11 = scmp.lt.u32.totalorder %s1222_s28, %s1218_s30  ;;  %p1226_p13 = scmp.lt.u32.totalorder %s1218_s30, %s1487_s12 }
 0x2cb   : > { %p1220_p7 = pnand %p1219_p6, %p1392_p4 }
 0x2cc   : > { %p1225_p12 = por %p1224_p11, %p1223_p10 }
 0x2cd   : > { %p1221_p9 = pneg %p1220_p7 }
 0x2ce   : > { %p1227_p0 = por %p1226_p13, %p1225_p12 }
 0x2d0   : > { %p1228_p1 = pnand %p1227_p0, %p1221_p9 }
 0x2d2   : > { %1231 = shalt.err (!%p1228_p1)
}
 0x2d3   : > { %s1296_s19 = smov 128   ;;  %s1557_s22 = smov 8  }
 0x2d4   : > { %1133 = dma.vmem_to_hbm [thread:$0]  (%p1392_p4), %s1489_s29, 384, %s1487_s12, %s1496_s16, %s1296_s19, %s1296_s19, %s1557_s22  }
 0x2d5 PF: > { %p1139_p2 = scmp.ge.s32.totalorder %s1282_s18, 2  ;;  %s939_s24 = sand.u32 1, %s1262_s13  }
 0x2d6   : > { %s940_s30 = scalar_lea.sflag [#allocation5], %s939_s24 }
 0x2d7   : > { %p1136_p3 = pnand %p1139_p2, %p1399_p8 }
 0x2d9   : > { %1257 = dma.done.wait (!%p1136_p3), %s940_s30, 384  }
 0x2da   : > { %1259 = vsyncadd (!%p1136_p3), %s940_s30, 4294966912  ;;  %s23_s18 = sadd.s32 1, %s1282_s18   ;;  %s1558_s13 = smov %s1266_s14 }
 0x2db   : > { %p20_p5 = scmp.ge.s32.totalorder %s23_s18, 4   ;;  %s1559_s14 = smov %s1270_s15 }
 0x2dc   : > { %s1560_s15 = smov %s1405_s26  ;;  %s1561_s16 = smov %s1278_s17 }
 0x2dd   : > { %s1562_s17 = smov %s1564_s21  ;;  %22 = sbr.rel (!%p20_p5) target bundleno = 4 (0x4), region = 116 }
 0x2e4   :  { %945 = vsyncpa [#allocation5], 1 }
 0x2e5   :  { %947 = vsyncpa [#allocation5 + $0x1], 1 }

</bundles_post_ra>
